<compile_context>
chip_gen: v7x
topology: tpu7x:2x2x1
jax: 0.10.0
libtpu: 0.0.40
codegen_flags: <defaults>
</compile_context>

<pallas_src>
import functools

import jax
import jax.numpy as jnp
from jax.experimental import pallas as pl
from jax.experimental.pallas import tpu as pltpu


def _dice_kernel(out_ref, tgt_ref, num_ref, den_ref, *, hw, tile, ragged):
    """Accumulate per-row (= per (n, c)) partial numerator/denominator sums.

    Grid = (row_blocks, hw_tiles). The hw axis is the reduction axis; the
    output blocks (num_ref / den_ref) keep the same block index across it,
    so they stay resident in VMEM and ARE the accumulators (no scratch).
    Hot loop: exp (EUP) + mul/add (VPU) + one cross-lane reduce (XLU) + a
    tiny (rows, 1) accumulate.
    """
    j = pl.program_id(1)

    @pl.when(j == 0)
    def _():
        num_ref[...] = jnp.zeros_like(num_ref)
        den_ref[...] = jnp.zeros_like(den_ref)

    o = jnp.exp(out_ref[...].astype(jnp.float32))   # (rows_blk, tile)
    t = tgt_ref[...].astype(jnp.float32)            # (rows_blk, tile)

    def _accumulate(o_v, t_v):
        num_ref[...] += jnp.sum(o_v * t_v, axis=-1, keepdims=True)
        den_ref[...] += jnp.sum(o_v + t_v, axis=-1, keepdims=True)

    if ragged:
        last = pl.num_programs(1) - 1

        @pl.when(j != last)
        def _():
            _accumulate(o, t)

        @pl.when(j == last)
        def _():
            lane = jax.lax.broadcasted_iota(jnp.int32, o.shape, 1)
            valid = lane < (hw - j * tile)
            # NOTE: out-of-bounds lanes of the partial tile hold exp(<garbage>)
            # which may be inf/nan; keep this a *select* (jnp.where), NOT
            # arithmetic masking (o * valid), or the padding would propagate.
            _accumulate(jnp.where(valid, o, 0.0), jnp.where(valid, t, 0.0))
    else:
        _accumulate(o, t)


def _vmem_budget_bytes():
    cap = None
    try:
        info = pltpu.get_tpu_info()
        cap = getattr(info, "vmem_capacity_bytes", None)
    except Exception:
        cap = None
    if cap is None:
        cap = 64 << 20          # conservative: smallest (v7x per-TC) VMEM
    # ~half of physical VMEM minus headroom, capped at 48 MiB:
    #   v7x (64 MiB) -> 24 MiB;  v5e/v6e (128 MiB) -> 48 MiB.
    return max(8 << 20, min(48 << 20, cap // 2 - (8 << 20)))


def dice_loss(output, target, *, max_rows_per_block=512, max_tile_hw=131072,
              vmem_budget_bytes=None):
    """Matches DiceLoss.forward with weights=None, ignore_index=None.

    output, target: (N, C, H, W) float arrays (NCHW, same as PyTorch).
    Returns a scalar float32 loss.
    """
    assert output.shape == target.shape and output.ndim == 4
    N, C, H, W = output.shape
    HW = H * W
    rows = N * C

    # Free, contiguous reshape (no transpose, no pad, no extra HBM traffic).
    out2 = output.reshape(rows, HW)
    tgt2 = target.reshape(rows, HW)

    if vmem_budget_bytes is None:
        vmem_budget_bytes = _vmem_budget_bytes()

    # Row-block: all rows if small (block dim == full array dim is always
    # legal), otherwise a multiple-of-8 chunk (partial last block OK).
    if rows <= max_rows_per_block:
        row_block, num_r = rows, 1
    else:
        row_block = (max_rows_per_block // 8) * 8
        num_r = pl.cdiv(rows, row_block)

    # Lane-tile width, sized against a sublane-padding-aware VMEM budget.
    # Per-step footprint ~= 2 inputs x 2 pipeline buffers x pad(rows) x tile
    # x itemsize (the (rows, 1) output accumulators are negligible).
    itemsize = jnp.dtype(output.dtype).itemsize
    sub = max(8, 32 // max(int(itemsize), 1))        # 8 for f32, 16 for bf16
    rows_pad = pl.cdiv(row_block, sub) * sub
    bytes_per_lane = 2 * 2 * rows_pad * int(itemsize)
    budget_tile = max(128, (vmem_budget_bytes // bytes_per_lane) // 128 * 128)
    hw_rounded = pl.cdiv(HW, 128) * 128
    tile = max(128, (min(hw_rounded, budget_tile, max_tile_hw) // 128) * 128)

    num_j = pl.cdiv(HW, tile)
    ragged = (HW % tile) != 0

    kernel = functools.partial(_dice_kernel, hw=HW, tile=tile, ragged=ragged)

    num_p, den_p = pl.pallas_call(
        kernel,
        out_shape=(jax.ShapeDtypeStruct((rows, 1), jnp.float32),
                   jax.ShapeDtypeStruct((rows, 1), jnp.float32)),
        grid_spec=pltpu.PrefetchScalarGridSpec(
            num_scalar_prefetch=0,
            grid=(num_r, num_j),
            in_specs=[
                pl.BlockSpec((row_block, tile), lambda r, j: (r, j)),
                pl.BlockSpec((row_block, tile), lambda r, j: (r, j)),
            ],
            out_specs=[
                pl.BlockSpec((row_block, 1), lambda r, j: (r, 0)),
                pl.BlockSpec((row_block, 1), lambda r, j: (r, 0)),
            ],
        ),
        compiler_params=pltpu.CompilerParams(
            # Row blocks are independent (each has its own resident output
            # accumulator) -> safe to shard across TensorCores on v7x.
            # The hw axis is the sequential reduction.
            dimension_semantics=("parallel", "arbitrary"),
            vmem_limit_bytes=int(vmem_budget_bytes + (16 << 20)),
        ),
    )(out2, tgt2)

    # Tiny final reduction + dice formula in plain JAX (a few hundred flops).
    # TODO(synk): `weights` / `ignore_index` constructor options are not
    # implemented (forward with weights=None, as in the reference usage).
    smooth = 1.0
    num_c = num_p.reshape(N, C).sum(axis=0)          # (C,)
    den_c = den_p.reshape(N, C).sum(axis=0)          # (C,)
    loss_per_channel = 1.0 - (2.0 * num_c + smooth) / (den_c + smooth)
    return loss_per_channel.sum() / C


def dice_loss_ref(output, target):
    """Pure-JAX reference mirroring the PyTorch forward exactly."""
    smooth = 1.0
    o = jnp.exp(output)
    intersection = o * target
    numerator = 2.0 * intersection.sum(3).sum(2).sum(0) + smooth
    denominator = (o + target).sum(3).sum(2).sum(0) + smooth
    loss_per_channel = 1.0 - numerator / denominator
    return loss_per_channel.sum() / output.shape[1]


if __name__ == "__main__":
    key = jax.random.PRNGKey(0)
    k1, k2, k3, k4 = jax.random.split(key, 4)

    # Primary case (lane-aligned HW = 256, single tile).
    N, C, H, W = 2, 4, 16, 16
    output = jax.random.normal(k1, (N, C, H, W), dtype=jnp.float32)
    labels = jax.random.randint(k2, (N, H, W), 0, C)
    target = jnp.transpose(jax.nn.one_hot(labels, C, dtype=jnp.float32),
                           (0, 3, 1, 2))                        # NCHW one-hot

    loss = jax.block_until_ready(dice_loss(output, target))
    ref = jax.block_until_ready(dice_loss_ref(output, target))
    assert jnp.allclose(loss, ref, rtol=1e-5, atol=1e-5), (loss, ref)

    # Ragged case (HW = 192, forced tile = 128) exercises the gated lane mask.
    N2, C2, H2, W2 = 2, 4, 12, 16
    out2 = jax.random.normal(k3, (N2, C2, H2, W2), dtype=jnp.float32)
    lab2 = jax.random.randint(k4, (N2, H2, W2), 0, C2)
    tgt2 = jnp.transpose(jax.nn.one_hot(lab2, C2, dtype=jnp.float32),
                         (0, 3, 1, 2))

    loss2 = jax.block_until_ready(dice_loss(out2, tgt2, max_tile_hw=128))
    ref2 = jax.block_until_ready(dice_loss_ref(out2, tgt2))
    assert jnp.allclose(loss2, ref2, rtol=1e-5, atol=1e-5), (loss2, ref2)

    print("KERNEL_OK")
</pallas_src>

<mosaic_0001>
module attributes {stable_mosaic.version = 11 : i64} {
  func.func @_dice_kernel(%arg0: i32, %arg1: i32, %arg2: memref<8x256xf32, #tpu.memory_space<vmem>>, %arg3: memref<8x256xf32, #tpu.memory_space<vmem>>, %arg4: memref<8x1xf32, #tpu.memory_space<vmem>>, %arg5: memref<8x1xf32, #tpu.memory_space<vmem>>) attributes {dimension_semantics = [#tpu.dimension_semantics<parallel>, #tpu.dimension_semantics<arbitrary>], iteration_bounds = array<i64: 1, 1>, scalar_prefetch = 0 : i64, scratch_operands = 0 : i64, tpu.core_type = #tpu.core_type<tc>, window_params = [{transform_indices = @transform_0, window_bounds = array<i64: 8, 256>}, {transform_indices = @transform_1, window_bounds = array<i64: 8, 256>}, {transform_indices = @transform_2, window_bounds = array<i64: 8, 1>}, {transform_indices = @transform_3, window_bounds = array<i64: 8, 1>}]} {
    %c0_i32 = arith.constant 0 : i32
    %0 = arith.cmpi eq, %arg1, %c0_i32 : i32
    %1 = arith.extui %0 : i1 to i32
    %c0_i32_0 = arith.constant 0 : i32
    %2 = arith.cmpi ne, %1, %c0_i32_0 : i32
    scf.if %2 {
      %cst_13 = arith.constant 0.000000e+00 : f32
      %18 = vector.broadcast %cst_13 : f32 to vector<8x1xf32>
      %c0_14 = arith.constant 0 : index
      %c0_15 = arith.constant 0 : index
      %19 = vector.load %arg4[%c0_14, %c0_15] : memref<8x1xf32, #tpu.memory_space<vmem>>, vector<8x1xf32>
      tpu.vector_store %arg4[%c0_14, %c0_15], %18 {strides = array<i32>} : memref<8x1xf32, #tpu.memory_space<vmem>>, vector<8x1xf32>,
      %cst_16 = arith.constant 0.000000e+00 : f32
      %20 = vector.broadcast %cst_16 : f32 to vector<8x1xf32>
      %c0_17 = arith.constant 0 : index
      %c0_18 = arith.constant 0 : index
      %21 = vector.load %arg5[%c0_17, %c0_18] : memref<8x1xf32, #tpu.memory_space<vmem>>, vector<8x1xf32>
      tpu.vector_store %arg5[%c0_17, %c0_18], %20 {strides = array<i32>} : memref<8x1xf32, #tpu.memory_space<vmem>>, vector<8x1xf32>,
    } else {
    }
    %c0 = arith.constant 0 : index
    %c0_1 = arith.constant 0 : index
    %3 = vector.load %arg2[%c0, %c0_1] : memref<8x256xf32, #tpu.memory_space<vmem>>, vector<8x256xf32>
    %4 = math.exp %3 : vector<8x256xf32>
    %c0_2 = arith.constant 0 : index
    %c0_3 = arith.constant 0 : index
    %5 = vector.load %arg3[%c0_2, %c0_3] : memref<8x256xf32, #tpu.memory_space<vmem>>, vector<8x256xf32>
    %c0_4 = arith.constant 0 : index
    %c0_5 = arith.constant 0 : index
    %6 = vector.load %arg4[%c0_4, %c0_5] : memref<8x1xf32, #tpu.memory_space<vmem>>, vector<8x1xf32>
    %7 = arith.mulf %4, %5 : vector<8x256xf32>
    %cst = arith.constant dense<0.000000e+00> : vector<8xf32>
    %8 = vector.multi_reduction <add>, %7, %cst [1] : vector<8x256xf32> to vector<8xf32>
    %9 = vector.shape_cast %8 : vector<8xf32> to vector<8x1xf32>
    %10 = arith.addf %6, %9 : vector<8x1xf32>
    %c0_6 = arith.constant 0 : index
    %c0_7 = arith.constant 0 : index
    %11 = vector.load %arg4[%c0_6, %c0_7] : memref<8x1xf32, #tpu.memory_space<vmem>>, vector<8x1xf32>
    tpu.vector_store %arg4[%c0_6, %c0_7], %10 {strides = array<i32>} : memref<8x1xf32, #tpu.memory_space<vmem>>, vector<8x1xf32>,
    %c0_8 = arith.constant 0 : index
    %c0_9 = arith.constant 0 : index
    %12 = vector.load %arg5[%c0_8, %c0_9] : memref<8x1xf32, #tpu.memory_space<vmem>>, vector<8x1xf32>
    %13 = arith.addf %4, %5 : vector<8x256xf32>
    %cst_10 = arith.constant dense<0.000000e+00> : vector<8xf32>
    %14 = vector.multi_reduction <add>, %13, %cst_10 [1] : vector<8x256xf32> to vector<8xf32>
    %15 = vector.shape_cast %14 : vector<8xf32> to vector<8x1xf32>
    %16 = arith.addf %12, %15 : vector<8x1xf32>
    %c0_11 = arith.constant 0 : index
    %c0_12 = arith.constant 0 : index
    %17 = vector.load %arg5[%c0_11, %c0_12] : memref<8x1xf32, #tpu.memory_space<vmem>>, vector<8x1xf32>
    tpu.vector_store %arg5[%c0_11, %c0_12], %16 {strides = array<i32>} : memref<8x1xf32, #tpu.memory_space<vmem>>, vector<8x1xf32>,
    return
  }
  func.func @transform_0(%arg0: i32, %arg1: i32) -> (i32, i32) {
    %c0_i32 = arith.constant 0 : i32
    return %arg0, %arg1 : i32, i32
  }
  func.func @transform_1(%arg0: i32, %arg1: i32) -> (i32, i32) {
    %c0_i32 = arith.constant 0 : i32
    return %arg0, %arg1 : i32, i32
  }
  func.func @transform_2(%arg0: i32, %arg1: i32) -> (i32, i32) {
    %c0_i32 = arith.constant 0 : i32
    %c0_i32_0 = arith.constant 0 : i32
    return %arg0, %c0_i32 : i32, i32
  }
  func.func @transform_3(%arg0: i32, %arg1: i32) -> (i32, i32) {
    %c0_i32 = arith.constant 0 : i32
    %c0_i32_0 = arith.constant 0 : i32
    return %arg0, %c0_i32 : i32, i32
  }
}

</mosaic_0001>

<bundles_post_ra>
// kernel: tpu_custom_call.1
= control target key start
LH: loop header
LB: loop body
LE: loop exit
PB: predicated region body
PF: predicated region fallthrough
CT: control target
= control target key end

     0   :  { %9 = vsyncpa [#allocation3], 0  ;;  %s203_s0 = inlined_call_operand.hbm [shape: f32[8,256], index: 0, kind: input, shape index: {}]   ;;  %s204_s1 = inlined_call_operand.hbm [shape: f32[8,256], index: 1, kind: input, shape index: {}]   ;;  %s205_s2 = inlined_call_operand.vmem [shape: f32[8,1], index: 2, kind: output, shape index: {0}]   ;;  %s206_s3 = inlined_call_operand.vmem [shape: f32[8,1], index: 3, kind: output, shape index: {1}]  }
   0x1   :  { %10 = vsyncpa [#allocation5], 0  ;;  %s134_s12 = smov [#allocation2]   ;;  %s135_s14 = smov [#allocation4]  }
   0x2   :  { %s17_s13 = sshll.u32 %s134_s12, 4  ;;  %s27_s15 = sshll.u32 %s135_s14, 4  ;;  %s18_s13 = int_to_ptr.vmem [resolvable:$true] %s17_s13  ;;  %s28_s15 = int_to_ptr.vmem [resolvable:$true] %s27_s15 }
   0x3   :  { %s86_s18 = scalar_lea.hbm %s203_s0, 256 }
   0x4   :  { %p87_p0 = scmp.ne.s32.totalorder %s203_s0, %s86_s18  ;;  %p90_p1 = scmp.lt.u32.totalorder %s86_s18, %s203_s0 }
   0x6   :  { %p92_p2 = pnand %p90_p1, %p87_p0 }
   0x8   :  { %95 = shalt.err (!%p92_p2)
}
   0x9   :  { %s96_s23 = scalar_lea.vmem %s18_s13, 256  ;;  %p101_p4 = scmp.lt.s32.totalorder %s18_s13, %s18_s13 }
   0xa   :  { %p97_p3 = scmp.ne.s32.totalorder %s18_s13, %s96_s23  ;;  %p102_p5 = scmp.lt.s32.totalorder %s96_s23, %s96_s23 }
   0xc   :  { %p103_p6 = por %p102_p5, %p101_p4 }
   0xe   :  { %p104_p7 = pnand %p103_p6, %p97_p3 }
  0x10   :  { %107 = shalt.err (!%p104_p7)
}
  0x11   :  { %20 = dma.hbm_to_vmem [thread:$0]  %s203_s0, 256, %s18_s13, [#allocation3]  }
  0x12   :  { %s108_s28 = scalar_lea.hbm %s204_s1, 256 }
  0x13   :  { %p109_p8 = scmp.ne.s32.totalorder %s204_s1, %s108_s28  ;;  %p112_p9 = scmp.lt.u32.totalorder %s108_s28, %s204_s1 }
  0x15   :  { %p114_p10 = pnand %p112_p9, %p109_p8 }
  0x17   :  { %117 = shalt.err (!%p114_p10)
}
  0x18   :  { %s118_s6 = scalar_lea.vmem %s28_s15, 256  ;;  %p123_p12 = scmp.lt.s32.totalorder %s28_s15, %s28_s15 }
  0x19   :  { %p119_p11 = scmp.ne.s32.totalorder %s28_s15, %s118_s6  ;;  %p124_p13 = scmp.lt.s32.totalorder %s118_s6, %s118_s6 }
  0x1b   :  { %p125_p0 = por %p124_p13, %p123_p12 }
  0x1d   :  { %p126_p1 = pnand %p125_p0, %p119_p11 }
  0x1f   :  { %129 = shalt.err (!%p126_p1)
}
  0x20   :  { %30 = dma.hbm_to_vmem [thread:$0]  %s204_s1, 256, %s28_s15, [#allocation5]  }
  0x21   :  { %130 = dma.done.wait [#allocation3], 256  }
  0x22   :  { %131 = vsyncadd [#allocation3], 4294967040 }
  0x23   :  { %132 = dma.done.wait [#allocation5], 256  }
  0x24   :  { %133 = vsyncadd [#allocation5], 4294967040  ;;  %vm41_vm0 = vcmask 7168   ;;  %v136_v0 = vmov 0.0   ;;  %v44_v1 = vld [vmem:[#allocation2] sm:$0xff]  ;;  %v45_v2 = vld [vmem:[#allocation2 + $0x8] sm:$0xff] }
  0x25   :  { %42 = vst.msk [vmem:[%s205_s2] sm:$0xff] %vm41_vm0, %v136_v0  ;;  %43 = vst.msk [vmem:[%s206_s3] sm:$0xff] %vm41_vm0, %v136_v0  ;;  %v46_v3 = vmul.f32 1.442695, %v44_v1  ;;  %v48_v4 = vmul.f32 1.442695, %v45_v2 }
  0x26   :  { %v50_v5 = vld [vmem:[#allocation4] sm:$0xff]  ;;  %v51_v6 = vld [vmem:[#allocation4 + $0x8] sm:$0xff] }
  0x27   :  { %82 = vpow2.f32 %v46_v3 }
  0x28   :  { %84 = vpow2.f32 %v48_v4 }
  0x2c   :  { %v52_v15 = vld [vmem:[%s205_s2] sm:$0xff] }
  0x2d   :  { %v61_v18 = vld [vmem:[%s206_s3] sm:$0xff] }
  0x31   :  { %v83_v7 = vpop.eup %82 }
  0x32   :  { %v85_v8 = vpop.eup %84  ;;  %v53_v9 = vmul.f32 %v83_v7, %v50_v5  ;;  %v62_v11 = vadd.f32 %v83_v7, %v50_v5 }
  0x33   :  { %v54_v10 = vmul.f32 %v85_v8, %v51_v6  ;;  %v63_v12 = vadd.f32 %v85_v8, %v51_v6 }
  0x35   :  { %v55_v13 = vadd.f32 %v54_v10, %v53_v9  ;;  %v64_v14 = vadd.f32 %v63_v12, %v62_v11 }
  0x37   :  { %56 = vadd.xlane.f32.xlu0 %v55_v13 }
  0x3b   :  { %65 = vadd.xlane.f32.xlu0 %v64_v14 }
  0xc4   :  { %v57_v16 = vpop.xlane.xlu0 %56 }
  0xc5   :  { %v58_v17 = vadd.f32 %v57_v16, %v52_v15 }
  0xc7   :  { %60 = vst.msk [vmem:[%s205_s2] sm:$0xff] %vm41_vm0, %v58_v17 }
  0xc8   :  { %v66_v19 = vpop.xlane.xlu0 %65 }
  0xc9   :  { %v67_v20 = vadd.f32 %v66_v19, %v61_v18 }
  0xcb   :  { %68 = vst.msk [vmem:[%s206_s3] sm:$0xff] %vm41_vm0, %v67_v20 }
  0xcc   :  { %77 = vsyncpa [#allocation3], 1 }
  0xcd   :  { %78 = vsyncpa [#allocation5], 1 }

</bundles_post_ra>
